<compile_context>
chip_gen: v7x
topology: tpu7x:2x2x1
jax: 0.10.0
libtpu: 0.0.40
codegen_flags: <defaults>
</compile_context>

<pallas_src>
import functools

import jax
import jax.numpy as jnp
from jax.experimental import pallas as pl
from jax.experimental.pallas import tpu as pltpu

DEFAULT_ALPHA = 0.25
DEFAULT_GAMMA = 2
DEFAULT_NUM_CLASSES = 12


def _round_up(x, m):
    return ((x + m - 1) // m) * m


def _focal_loss_kernel(logits_ref, label_ref, out_ref, *,
                       alpha, gamma, smoothing, num_classes, n_valid):
    i = pl.program_id(0)          # parallel (core) axis
    j = pl.program_id(1)          # reduction axis over lane tiles

    @pl.when(j == 0)
    def _init():
        out_ref[...] = jnp.zeros_like(out_ref)

    x = logits_ref[...].astype(jnp.float32)        # (C, TN) — classes on sublanes, batch on lanes
    lbl = label_ref[...]                           # (1, TN) int32
    C, TN = x.shape

    # one-hot over the sublane (class) axis
    cls = jax.lax.broadcasted_iota(jnp.int32, (C, TN), 0)
    onehot = (cls == lbl).astype(jnp.float32)

    if smoothing > 0.0:
        lb_pos = 1.0 - smoothing
        lb_neg = smoothing / (num_classes - 1)
        target = onehot * (lb_pos - lb_neg) + lb_neg
    else:
        target = onehot

    # Numerically-stable sigmoid / log-sigmoid with a single exp and a single log1p.
    t = jnp.exp(-jnp.abs(x))                       # EUP exp
    log1p_t = jnp.log1p(t)                         # EUP log
    pos = x >= 0.0
    log_probs = jnp.where(pos, -log1p_t, x - log1p_t)     # log(sigmoid(x))
    log_1_probs = log_probs - x                            # log(1 - sigmoid(x)), exact identity
    inv_denom = 1.0 / (1.0 + t)                            # EUP reciprocal
    probs = jnp.where(pos, inv_denom, t * inv_denom)       # sigmoid(x)

    d = onehot - probs
    if gamma == 2:
        coeff = -(d * d)                                   # even power: plain VPU multiplies
    else:
        coeff = -(jnp.abs(d) ** gamma)                     # gamma is a Python int -> integer_pow

    loss = (target * alpha * log_probs
            + (1.0 - target) * (1.0 - alpha) * log_1_probs) * coeff

    # mask padded batch columns (global column index >= n_valid contributes zero)
    col0 = (i * pl.num_programs(1) + j) * TN
    lane = jax.lax.broadcasted_iota(jnp.int32, (C, TN), 1)
    loss = jnp.where(col0 + lane < n_valid, loss, 0.0)

    # element-wise partial-sum accumulation into the (1, C, TN) per-core output block
    out_ref[...] += loss[None, :, :]


def focal_loss(logits, label, *, alpha=DEFAULT_ALPHA, gamma=DEFAULT_GAMMA,
               reduction="mean", num_classes=DEFAULT_NUM_CLASSES, smoothing=0.0,
               tile_n=512, num_cores=2):
    N, C = logits.shape
    assert C == num_classes

    # lane-dense layout: (N, C) -> (C, N); labels as a (1, N) row broadcast down sublanes
    logits_t = jnp.transpose(logits).astype(jnp.float32)
    labels = label.astype(jnp.int32).reshape(1, N)

    P = num_cores
    cols_per_core = max(128, _round_up(-(-N // P), 128))
    tile = _round_up(min(tile_n, cols_per_core), 128)
    cols_per_core = _round_up(cols_per_core, tile)
    K = cols_per_core // tile
    n_pad = P * cols_per_core

    if n_pad != N:
        logits_t = jnp.pad(logits_t, ((0, 0), (0, n_pad - N)))
        labels = jnp.pad(labels, ((0, 0), (0, n_pad - N)), constant_values=-1)

    kernel = functools.partial(
        _focal_loss_kernel, alpha=float(alpha), gamma=gamma,
        smoothing=float(smoothing), num_classes=num_classes, n_valid=N)

    partials = pl.pallas_call(
        kernel,
        out_shape=jax.ShapeDtypeStruct((P, C, tile), jnp.float32),
        grid_spec=pltpu.PrefetchScalarGridSpec(
            num_scalar_prefetch=0,
            grid=(P, K),
            in_specs=[
                pl.BlockSpec((C, tile), lambda i, j: (0, i * K + j)),   # logits tile
                pl.BlockSpec((1, tile), lambda i, j: (0, i * K + j)),   # label tile
            ],
            out_specs=pl.BlockSpec((1, C, tile), lambda i, j: (i, 0, 0)),
        ),
        compiler_params=pltpu.CompilerParams(
            dimension_semantics=("parallel", "arbitrary")),
    )(logits_t, labels)

    total = jnp.sum(partials)
    if reduction == "mean":
        return total / (N * C)
    if reduction == "sum":
        return total
    # TODO(synk): reduction='none' (per-element (N, C) output) not implemented; 'mean'/'sum' only.
    return total


def _focal_loss_reference(logits, label, *, alpha=DEFAULT_ALPHA, gamma=DEFAULT_GAMMA,
                          num_classes=DEFAULT_NUM_CLASSES, smoothing=0.0):
    onehot = jax.nn.one_hot(label, num_classes, dtype=jnp.float32)
    probs = jax.nn.sigmoid(logits)
    coeff = -(jnp.abs(onehot - probs) ** gamma)
    logp = jax.nn.log_sigmoid(logits)
    log1mp = jax.nn.log_sigmoid(-logits)
    if smoothing > 0.0:
        lb_pos, lb_neg = 1.0 - smoothing, smoothing / (num_classes - 1)
        target = onehot * (lb_pos - lb_neg) + lb_neg
    else:
        target = onehot
    loss = (target * alpha * logp + (1.0 - target) * (1.0 - alpha) * log1mp) * coeff
    return loss.mean()


if __name__ == "__main__":
    key = jax.random.PRNGKey(0)
    k1, k2 = jax.random.split(key)
    C = DEFAULT_NUM_CLASSES

    # small config (matches module defaults)
    N = 16
    logits = jax.random.normal(k1, (N, C), dtype=jnp.float32) * 2.0
    label = jax.random.randint(k2, (N,), 0, C, dtype=jnp.int32)
    out = jax.block_until_ready(focal_loss(logits, label))
    ref = _focal_loss_reference(logits, label)
    assert jnp.allclose(out, ref, rtol=1e-5, atol=1e-6), (out, ref)

    # second config: multiple reduction steps per core + padding/masking path
    N2 = 600
    k3, k4 = jax.random.split(k1)
    logits2 = jax.random.normal(k3, (N2, C), dtype=jnp.float32) * 3.0
    label2 = jax.random.randint(k4, (N2,), 0, C, dtype=jnp.int32)
    out2 = jax.block_until_ready(focal_loss(logits2, label2, tile_n=128))
    ref2 = _focal_loss_reference(logits2, label2)
    assert jnp.allclose(out2, ref2, rtol=1e-5, atol=1e-6), (out2, ref2)

    print("KERNEL_OK")
</pallas_src>

<mosaic_0001>
module attributes {stable_mosaic.version = 11 : i64} {
  func.func @_focal_loss_kernel(%arg0: i32, %arg1: i32, %arg2: memref<12x128xf32, #tpu.memory_space<vmem>>, %arg3: memref<1x128xi32, #tpu.memory_space<vmem>>, %arg4: memref<1x12x128xf32, #tpu.memory_space<vmem>>) attributes {dimension_semantics = [#tpu.dimension_semantics<parallel>, #tpu.dimension_semantics<arbitrary>], iteration_bounds = array<i64: 2, 1>, scalar_prefetch = 0 : i64, scratch_operands = 0 : i64, tpu.core_type = #tpu.core_type<tc>, window_params = [{transform_indices = @transform_0, window_bounds = array<i64: 12, 128>}, {transform_indices = @transform_1, window_bounds = array<i64: 1, 128>}, {transform_indices = @transform_2, window_bounds = array<i64: 1, 12, 128>}]} {
    %c0_i32 = arith.constant 0 : i32
    %0 = arith.cmpi eq, %arg1, %c0_i32 : i32
    %1 = arith.extui %0 : i1 to i32
    %c0_i32_0 = arith.constant 0 : i32
    %2 = arith.cmpi ne, %1, %c0_i32_0 : i32
    scf.if %2 {
      %cst_19 = arith.constant 0.000000e+00 : f32
      %56 = vector.broadcast %cst_19 : f32 to vector<1x12x128xf32>
      %c0_20 = arith.constant 0 : index
      %c0_21 = arith.constant 0 : index
      %c0_22 = arith.constant 0 : index
      %57 = vector.load %arg4[%c0_20, %c0_21, %c0_22] : memref<1x12x128xf32, #tpu.memory_space<vmem>>, vector<1x12x128xf32>
      tpu.vector_store %arg4[%c0_20, %c0_21, %c0_22], %56 {strides = array<i32>} : memref<1x12x128xf32, #tpu.memory_space<vmem>>, vector<1x12x128xf32>,
    } else {
    }
    %c0 = arith.constant 0 : index
    %c0_1 = arith.constant 0 : index
    %3 = vector.load %arg2[%c0, %c0_1] : memref<12x128xf32, #tpu.memory_space<vmem>>, vector<12x128xf32>
    %c0_2 = arith.constant 0 : index
    %c0_3 = arith.constant 0 : index
    %4 = vector.load %arg3[%c0_2, %c0_3] : memref<1x128xi32, #tpu.memory_space<vmem>>, vector<1x128xi32>
    %5 = tpu.iota {dimensions = array<i32: 0>} : vector<12x128xi32>
    %6 = vector.broadcast %4 : vector<1x128xi32> to vector<12x128xi32>
    %7 = arith.cmpi eq, %5, %6 : vector<12x128xi32>
    %8 = arith.extui %7 : vector<12x128xi1> to vector<12x128xi32>
    %9 = arith.sitofp %8 : vector<12x128xi32> to vector<12x128xf32>
    %10 = math.absf %3 : vector<12x128xf32>
    %cst = arith.constant 0.000000e+00 : f32
    %11 = vector.broadcast %cst : f32 to vector<12x128xf32>
    %12 = arith.subf %11, %10 : vector<12x128xf32>
    %13 = math.exp %12 : vector<12x128xf32>
    %14 = math.log1p %13 : vector<12x128xf32>
    %cst_4 = arith.constant 0.000000e+00 : f32
    %15 = vector.broadcast %cst_4 : f32 to vector<12x128xf32>
    %16 = arith.cmpf oge, %3, %15 : vector<12x128xf32>
    %cst_5 = arith.constant 0.000000e+00 : f32
    %17 = vector.broadcast %cst_5 : f32 to vector<12x128xf32>
    %18 = arith.subf %17, %14 : vector<12x128xf32>
    %19 = arith.subf %3, %14 : vector<12x128xf32>
    %20 = arith.select %16, %18, %19 : vector<12x128xi1>, vector<12x128xf32>
    %21 = arith.subf %20, %3 : vector<12x128xf32>
    %cst_6 = arith.constant 1.000000e+00 : f32
    %22 = vector.broadcast %cst_6 : f32 to vector<12x128xf32>
    %23 = arith.addf %22, %13 : vector<12x128xf32>
    %cst_7 = arith.constant 1.000000e+00 : f32
    %24 = vector.broadcast %cst_7 : f32 to vector<12x128xf32>
    %25 = arith.divf %24, %23 : vector<12x128xf32>
    %26 = arith.mulf %13, %25 : vector<12x128xf32>
    %27 = arith.select %16, %25, %26 : vector<12x128xi1>, vector<12x128xf32>
    %28 = arith.subf %9, %27 : vector<12x128xf32>
    %29 = arith.mulf %28, %28 : vector<12x128xf32>
    %cst_8 = arith.constant 0.000000e+00 : f32
    %30 = vector.broadcast %cst_8 : f32 to vector<12x128xf32>
    %31 = arith.subf %30, %29 : vector<12x128xf32>
    %cst_9 = arith.constant 2.500000e-01 : f32
    %32 = vector.broadcast %cst_9 : f32 to vector<12x128xf32>
    %33 = arith.mulf %9, %32 : vector<12x128xf32>
    %34 = arith.mulf %33, %20 : vector<12x128xf32>
    %cst_10 = arith.constant 1.000000e+00 : f32
    %35 = vector.broadcast %cst_10 : f32 to vector<12x128xf32>
    %36 = arith.subf %35, %9 : vector<12x128xf32>
    %cst_11 = arith.constant 7.500000e-01 : f32
    %37 = vector.broadcast %cst_11 : f32 to vector<12x128xf32>
    %38 = arith.mulf %36, %37 : vector<12x128xf32>
    %39 = arith.mulf %38, %21 : vector<12x128xf32>
    %40 = arith.addf %34, %39 : vector<12x128xf32>
    %41 = arith.mulf %40, %31 : vector<12x128xf32>
    %c1_i32 = arith.constant 1 : i32
    %42 = arith.muli %arg0, %c1_i32 : i32
    %43 = arith.addi %42, %arg1 : i32
    %c128_i32 = arith.constant 128 : i32
    %44 = arith.muli %43, %c128_i32 : i32
    %45 = tpu.iota {dimensions = array<i32: 1>} : vector<12x128xi32>
    %46 = vector.broadcast %44 : i32 to vector<12x128xi32>
    %47 = arith.addi %46, %45 : vector<12x128xi32>
    %c16_i32 = arith.constant 16 : i32
    %48 = vector.broadcast %c16_i32 : i32 to vector<12x128xi32>
    %49 = arith.cmpi slt, %47, %48 : vector<12x128xi32>
    %cst_12 = arith.constant 0.000000e+00 : f32
    %50 = vector.broadcast %cst_12 : f32 to vector<12x128xf32>
    %51 = arith.select %49, %41, %50 : vector<12x128xi1>, vector<12x128xf32>
    %c0_13 = arith.constant 0 : index
    %c0_14 = arith.constant 0 : index
    %c0_15 = arith.constant 0 : index
    %52 = vector.load %arg4[%c0_13, %c0_14, %c0_15] : memref<1x12x128xf32, #tpu.memory_space<vmem>>, vector<1x12x128xf32>
    %53 = vector.shape_cast %51 : vector<12x128xf32> to vector<1x12x128xf32>
    %54 = arith.addf %52, %53 : vector<1x12x128xf32>
    %c0_16 = arith.constant 0 : index
    %c0_17 = arith.constant 0 : index
    %c0_18 = arith.constant 0 : index
    %55 = vector.load %arg4[%c0_16, %c0_17, %c0_18] : memref<1x12x128xf32, #tpu.memory_space<vmem>>, vector<1x12x128xf32>
    tpu.vector_store %arg4[%c0_16, %c0_17, %c0_18], %54 {strides = array<i32>} : memref<1x12x128xf32, #tpu.memory_space<vmem>>, vector<1x12x128xf32>,
    return
  }
  func.func @transform_0(%arg0: i32, %arg1: i32) -> (i32, i32) {
    %c1_i32 = arith.constant 1 : i32
    %0 = arith.muli %arg0, %c1_i32 : i32
    %1 = arith.addi %0, %arg1 : i32
    %c0_i32 = arith.constant 0 : i32
    %c0_i32_0 = arith.constant 0 : i32
    return %c0_i32, %1 : i32, i32
  }
  func.func @transform_1(%arg0: i32, %arg1: i32) -> (i32, i32) {
    %c1_i32 = arith.constant 1 : i32
    %0 = arith.muli %arg0, %c1_i32 : i32
    %1 = arith.addi %0, %arg1 : i32
    %c0_i32 = arith.constant 0 : i32
    %c0_i32_0 = arith.constant 0 : i32
    return %c0_i32, %1 : i32, i32
  }
  func.func @transform_2(%arg0: i32, %arg1: i32) -> (i32, i32, i32) {
    %c0_i32 = arith.constant 0 : i32
    %c0_i32_0 = arith.constant 0 : i32
    %c0_i32_1 = arith.constant 0 : i32
    return %arg0, %c0_i32, %c0_i32_0 : i32, i32, i32
  }
}

</mosaic_0001>

<bundles_post_ra>
// kernel: tpu_custom_call.1
= control target key start
LH: loop header
LB: loop body
LE: loop exit
PB: predicated region body
PF: predicated region fallthrough
CT: control target
= control target key end

     0   :  { %7 = vsyncpa [#allocation3], 0  ;;  %s734_s0 = inlined_call_operand.hbm [shape: f32[12,256], index: 0, kind: input, shape index: {}]   ;;  %s735_s1 = inlined_call_operand.vmem [shape: s32[1,256], index: 1, kind: input, shape index: {}]   ;;  %s736_s2 = inlined_call_operand.vmem [shape: f32[2,12,128], index: 2, kind: output, shape index: {}]  }
   0x1   :  { %9 = vsyncpa [#allocation3 + $0x1], 0  ;;  %s578_s9 = smov 0   ;;  %s580_s10 = smov 0  }
   0x2   :  { %s582_s11 = smov 0   ;;  %s584_s12 = smov 0  }
   0x3   :  { %s586_s13 = smov 0   ;;  %s588_s14 = smov 0  }
   0x4 LB: > { %s388_s15 = sadd.s32 4294967295, %s556_s14   ;;  %s27_s16 = sadd.s32 1, %s552_s13  ;;  %s556_s14 = sphi %s588_s14, %s15_s14   ;;  %s552_s13 = sphi %s586_s13, %s745_s13   ;;  %s548_s12 = sphi %s584_s12, %s744_s12   ;;  %s544_s11 = sphi %s582_s11, %s743_s11   ;;  %s540_s10 = sphi %s580_s10, %s742_s10   ;;  %s536_s9 = sphi %s578_s9, %s741_s9  }
   0x5   : > { %p29_p0 = scmp.ge.s32.totalorder %s27_s16, 2  ;;  %s36_s17 = sadd.s32 1, %s544_s11 }
   0x6   : > { %p43_p1 = scmp.ne.s32.totalorder %s544_s11, %s540_s10  ;;  %p44_p2 = scmp.eq.s32.totalorder %s556_s14, 0 }
   0x7   : > { %s747_s16 = smov (%p29_p0, %s27_s16), 0  ;;  %p49_p4 = scmp.ne.s32.totalorder %s540_s10, %s536_s9 }
   0x8   : > { %p614_p3 = por %p44_p2, %p43_p1  ;;  %s33_s19 = ssub.s32 %s552_s13, %s747_s16 }
   0x9   : > { %p50_p5 = scmp.eq.s32.totalorder %s388_s15, 0  ;;  %p34_p6 = scmp.eq.s32.totalorder %s33_s19, 0 }
   0xa   : > { %p411_p8 = scmp.lt.s32.totalorder %s556_s14, 2  ;;  %s127_s22 = sand.u32 1, %s544_s11  }
   0xb   : > { %p621_p7 = por %p50_p5, %p49_p4  ;;  %s393_s23 = sshll.u32 %s552_s13, 7 }
   0xc   : > { %s627_s21 = scalar_select %p34_p6, %s544_s11, %s36_s17  }
   0xd   : > { %s392_s24 = sshll.u32 %s127_s22, 4  ;;  %s634_s27 = scalar_lea.hbm %s734_s0, %s393_s23 }
   0xe   : > { %s131_s28 = scalar_lea.vmem [#allocation2], %s392_s24  ;;  %p638_p9 = pnand %p411_p8, %p614_p3 }
   0xf   : > { %s138_s29 = sshll.u32 %s131_s28, 4  ;;  %s645_s3 = scalar_lea.sflag [#allocation3], %s127_s22  ;;  %s642_s29 = int_to_ptr.vmem [resolvable:$true] %s138_s29 }
  0x10   : > { %s476_s4 = scalar_lea.hbm %s634_s27, 256  ;;  %p478_p12 = pneg %p638_p9 }
  0x11   : > { %p477_p11 = scmp.ne.s32.totalorder %s634_s27, %s476_s4  ;;  %s481_s7 = scalar_lea.hbm %s734_s0, 512 }
  0x12   : > { %p482_p1 = scmp.lt.u32.totalorder %s634_s27, %s734_s0  ;;  %p483_p2 = scmp.lt.u32.totalorder %s481_s7, %s476_s4 }
  0x13   : > { %p479_p13 = pnand %p478_p12, %p477_p11  ;;  %p485_p4 = scmp.lt.u32.totalorder %s476_s4, %s634_s27 }
  0x14   : > { %p484_p3 = por %p483_p2, %p482_p1 }
  0x15   : > { %p480_p0 = pneg %p479_p13 }
  0x16   : > { %p486_p5 = por %p485_p4, %p484_p3 }
  0x18   : > { %p487_p6 = pnand %p486_p5, %p480_p0 }
  0x1a   : > { %490 = shalt.err (!%p487_p6)
}
  0x1b   : > { %s491_s15 = scalar_lea.vmem %s642_s29, 256  ;;  %s558_s17 = smov [#allocation2]  }
  0x1c   : > { %p492_p8 = scmp.ne.s32.totalorder %s642_s29, %s491_s15  ;;  %s496_s18 = sshll.u32 %s558_s17, 4  ;;  %s497_s18 = int_to_ptr.vmem [resolvable:$false] %s496_s18 }
  0x1d   : > { %s498_s19 = scalar_lea.vmem %s497_s18, 512  ;;  %p499_p10 = scmp.lt.s32.totalorder %s642_s29, %s497_s18 }
  0x1e   : > { %p494_p11 = pnand %p492_p8, %p478_p12  ;;  %p500_p1 = scmp.lt.s32.totalorder %s498_s19, %s491_s15 }
  0x20   : > { %p495_p13 = pneg %p494_p11  ;;  %p501_p2 = por %p500_p1, %p499_p10 }
  0x22   : > { %p502_p3 = pnand %p501_p2, %p495_p13 }
  0x24   : > { %505 = shalt.err (!%p502_p3)
}
  0x25   : > { %s559_s22 = smov 256   ;;  %s560_s23 = smov 128  }
  0x26   : > { %s561_s24 = smov 8   ;;  %p154_p12 = scmp.lt.s32.totalorder %s556_s14, 3 }
  0x27   : > { %410 = dma.hbm_to_vmem [thread:$0]  (!%p638_p9), %s634_s27, 256, %s642_s29, %s645_s3, %s559_s22, %s560_s23, %s561_s24  }
  0x28   : > { %p740_p0 = scmp.ge.s32.totalorder %s556_s14, 1 }
  0x2a   : > { %p155_p4 = pnand %p740_p0, %p154_p12 }
  0x2b   : > { %s160_s25 = sand.u32 (!%p155_p4), 1, %s540_s10  }
  0x2c   : > { %158 = sbr.rel (%p155_p4) target bundleno = 102 (0x66), region = 28  ;;  %s395_s26 = sshll.u32 (!%p155_p4), %s160_s25, 4 }
  0x2d   : > { %s161_s28 = scalar_lea.sflag (!%p155_p4), [#allocation3], %s160_s25  ;;  %s164_s4 = scalar_lea.vmem (!%p155_p4), [#allocation2], %s395_s26 }
  0x33   : > { %531 = dma.done.wait (%p621_p7), %s161_s28, 256  }
  0x34   : > { %533 = vsyncadd (%p621_p7), %s161_s28, 4294967040  ;;  %p191_p10 = scmp.lt.s32.totalorder %s548_s12, 1  ;;  %v562_v0 = vmov 0.0   ;;  %v689_v1 = vld [vmem:[%s164_s4] sm:$0xff]  ;;  %v691_v2 = vld [vmem:[%s164_s4 + $0x8] sm:$0xf]  ;;  %v209_v9 = vlaneseq }
  0x35   : > { %v222_v3 = vand.u32 2147483647, %v689_v1  ;;  %v223_v4 = vand.u32 2147483647, %v691_v2  ;;  %s401_s8 = sshll.u32 %s548_s12, 7  ;;  %vm248_vm4 = vcmp.ge.f32.partialorder %v689_v1, 0.0 }
  0x36   : > { %s192_s30 = scalar_select %p191_p10, %s548_s12, 1  ;;  %v210_v12 = vshrl.u32 %v209_v9, 7  ;;  %v292_v28 = vstv %s401_s8  ;;  %v291_v32 = vand.u32 127, %v209_v9  ;;  %vm249_vm5 = vcmp.ge.f32.partialorder %v691_v2, 0.0 }
  0x37   : > { %v224_v5 = vsub.f32 0.0, %v222_v3  ;;  %v225_v6 = vsub.f32 0.0, %v223_v4 }
  0x38   : > { %s404_s27 = sshll.u32 %s192_s30, 4  ;;  %s193_s7 = scalar_lea.vmem %s735_s1, %s192_s30  ;;  %v211_v17 = vadd.s32 8, %v210_v12  ;;  %v293_v60 = vadd.s32 %v292_v28, %v291_v32 }
  0x39   : > { %s686_s5 = scalar_lea.vmem %s736_s2, %s404_s27  ;;  %v226_v7 = vmul.f32 1.442695, %v224_v5  ;;  %v228_v8 = vmul.f32 1.442695, %v225_v6  ;;  %v398_v16 = vld [vmem:[%s193_s7] ss:$0 sm:$0xff] }
  0x3a   : > { %205 = vst [vmem:[%s686_s5 + $0x8] sm:$0xf] %v562_v0  ;;  %vm216_vm0 = vcmp.eq.s32.totalorder %v210_v12, %v398_v16  ;;  %vm217_vm1 = vcmp.eq.s32.totalorder %v211_v17, %v398_v16  ;;  %vm294_vm6 = vcmp.lt.s32.totalorder %v293_v60, 16 }
  0x3b   : > { %464 = vpow2.f32 %v226_v7  ;;  %v399_v23 = vsel %vm216_vm0, 1.0, %v562_v0  ;;  %v400_v24 = vsel %vm217_vm1, 1.0, %v562_v0 }
  0x3c   : > { %466 = vpow2.f32 %v228_v8  ;;  %v278_v31 = vsub.f32 1.0, %v399_v23  ;;  %v279_v35 = vsub.f32 1.0, %v400_v24  ;;  %v274_v39 = vmul.f32 0.25, %v399_v23 }
  0x3d   : > { %v275_v40 = vmul.f32 0.25, %v400_v24 }
  0x3e   : > { %v280_v48 = vmul.f32 0.75, %v278_v31  ;;  %v281_v52 = vmul.f32 0.75, %v279_v35 }
  0x41   : > { %v298_v7 = vld [vmem:[%s686_s5 + $0x8] sm:$0xf] }
  0x45   : > { %v465_v10 = vpop.eup %464 }
  0x46   : > { %v467_v11 = vpop.eup %466  ;;  %v230_v13 = vadd.f32 1.0, %v465_v10  ;;  %v233_v15 = vmul.f32 -0.5, %v465_v10  ;;  %v236_v20 = vand.u32 2147483647, %v465_v10 }
  0x47   : > { %v239_v14 = vadd.f32 1.0, %v467_v11  ;;  %v242_v18 = vmul.f32 -0.5, %v467_v11  ;;  %v245_v22 = vand.u32 2147483647, %v467_v11 }
  0x48   : > { %468 = vlog2.f32 %v230_v13  ;;  %v234_v19 = vadd.f32 1.0, %v233_v15  ;;  %vm237_vm2 = vcmp.lt.f32.partialorder %v236_v20, 0.0004427343 }
  0x49   : > { %470 = vlog2.f32 %v239_v14  ;;  %v243_v21 = vadd.f32 1.0, %v242_v18  ;;  %vm246_vm3 = vcmp.lt.f32.partialorder %v245_v22, 0.0004427343 }
  0x4a   : > { %472 = vrcp.f32 %v230_v13  ;;  %v235_v25 = vmul.f32 %v465_v10, %v234_v19 }
  0x4b   : > { %474 = vrcp.f32 %v239_v14  ;;  %v244_v27 = vmul.f32 %v467_v11, %v243_v21 }
  0x52   : > { %v469_v26 = vpop.eup %468 }
  0x53   : > { %v471_v29 = vpop.eup %470  ;;  %v232_v30 = vmul.f32 0.6931472, %v469_v26 }
  0x54   : > { %v473_v33 = vpop.eup %472  ;;  %v241_v34 = vmul.f32 0.6931472, %v471_v29 }
  0x55   : > { %v475_v36 = vpop.eup %474  ;;  %v238_v37 = vsel %vm237_vm2, %v235_v25, %v232_v30  ;;  %v264_v38 = vmul.f32 %v473_v33, %v465_v10 }
  0x56   : > { %v247_v41 = vsel %vm246_vm3, %v244_v27, %v241_v34  ;;  %v250_v42 = vsub.f32 0.0, %v238_v37  ;;  %v252_v43 = vsub.f32 %v689_v1, %v238_v37  ;;  %v265_v44 = vmul.f32 %v475_v36, %v467_v11 }
  0x57   : > { %v251_v45 = vsub.f32 0.0, %v247_v41  ;;  %v253_v46 = vsub.f32 %v691_v2, %v247_v41  ;;  %v266_v47 = vsel %vm248_vm4, %v473_v33, %v264_v38 }
  0x58   : > { %v254_v49 = vsel %vm248_vm4, %v250_v42, %v252_v43  ;;  %v267_v50 = vsel %vm249_vm5, %v475_v36, %v265_v44  ;;  %v268_v51 = vsub.f32 %v399_v23, %v266_v47 }
  0x59   : > { %v255_v53 = vsel %vm249_vm5, %v251_v45, %v253_v46  ;;  %v256_v54 = vsub.f32 %v254_v49, %v689_v1  ;;  %v269_v55 = vsub.f32 %v400_v24, %v267_v50  ;;  %v276_v56 = vmul.f32 %v274_v39, %v254_v49 }
  0x5a   : > { %v257_v57 = vsub.f32 %v255_v53, %v691_v2  ;;  %v270_v58 = vmul.f32 %v268_v51, %v268_v51  ;;  %v277_v59 = vmul.f32 %v275_v40, %v255_v53 }
  0x5b   : > { %v271_v61 = vmul.f32 %v269_v55, %v269_v55  ;;  %v282_v62 = vmul.f32 %v280_v48, %v256_v54 }
  0x5c   : > { %v272_v63 = vsub.f32 0.0, %v270_v58  ;;  %v283_v0 = vmul.f32 %v281_v52, %v257_v57 }
  0x5d   : > { %v273_v3 = vsub.f32 0.0, %v271_v61  ;;  %v284_v4 = vadd.f32 %v282_v62, %v276_v56 }
  0x5e   : > { %v285_v5 = vadd.f32 %v283_v0, %v277_v59 }
  0x5f   : > { %v286_v6 = vmul.f32 %v284_v4, %v272_v63 }
  0x60   : > { %v287_v1 = vmul.f32 %v285_v5, %v273_v3 }
  0x61   : > { %v295_v8 = vsel %vm294_vm6, %v286_v6, 0.0 }
  0x62   : > { %v296_v9 = vsel %vm294_vm6, %v287_v1, 0.0  ;;  %301 = vst [vmem:[%s686_s5] sm:$0xff] %v295_v8 }
  0x63   : > { %v300_v10 = vadd.f32 %v298_v7, %v296_v9 }
  0x65   : > { %302 = vst [vmem:[%s686_s5 + $0x8] sm:$0xf] %v300_v10 }
  0x66 PF: > { %s15_s14 = sadd.s32 1, %s556_s14   ;;  %s741_s9 = smov %s540_s10 }
  0x67   : > { %p12_p7 = scmp.ge.s32.totalorder %s15_s14, 4   ;;  %s742_s10 = smov %s544_s11 }
  0x68   : > { %s743_s11 = smov %s627_s21  ;;  %s744_s12 = smov %s552_s13 }
  0x69   : > { %s745_s13 = smov %s747_s16  ;;  %14 = sbr.rel (!%p12_p7) target bundleno = 4 (0x4), region = 75 }
  0x70   :  { %324 = vsyncpa [#allocation3], 1 }
  0x71   :  { %326 = vsyncpa [#allocation3 + $0x1], 1 }

</bundles_post_ra>
